<compile_context>
chip_gen: v7x
topology: tpu7x:2x2x1
jax: 0.10.0
libtpu: 0.0.40
codegen_flags: <defaults>
</compile_context>

<pallas_src>
import jax
import jax.numpy as jnp
from jax.experimental import pallas as pl
from jax.experimental.pallas import tpu as pltpu

LANES = 128
HIDDEN = 16
MIN_TM = 256        # >=128 KiB per tile: amortizes the ~0.35us per-grid-step overhead
TARGET_STEPS = 4    # ~4 grid steps: DMA overlaps compute; 2 steps per v7x TensorCore


def _round_up(a, b):
    return ((a + b - 1) // b) * b


def _choose_grid(rows, block_rows):
    """Pick (tm, rows_pad) with tm % 8 == 0 and rows_pad % tm == 0."""
    max_tm = _round_up(max(block_rows, 8), 8)      # keep tm (8,128)-aligned even for odd block_rows
    if rows <= 2 * MIN_TM:
        # Small batch: launch overhead dominates; one 8-aligned tile is best.
        tm = min(_round_up(rows, 8), max_tm)
        return tm, _round_up(rows, tm)
    # Large batch: aim for ~TARGET_STEPS even grid steps of >= MIN_TM rows each.
    steps = min(TARGET_STEPS, max(2, rows // MIN_TM))
    steps = max(steps, pl.cdiv(rows, max_tm))      # respect the block_rows cap
    if steps % 2:
        steps += 1                                 # balanced across v7x's 2 TensorCores
    tm = _round_up(pl.cdiv(rows, steps), 8)
    tm = max(8, min(tm, max_tm))
    return tm, _round_up(rows, tm)


def studentnet_kernel(params_ref, x_ref, o_ref):
    """params_ref: (64,) f32 SMEM; [0:16]=w1, [16:32]=b1, [32:48]=w2, [48]=b2.
       x_ref / o_ref: (tm, 128) f32 VMEM tiles (batch elements on the lane axis)."""
    x = x_ref[...]
    # Fold b2 into the accumulator init (saves one full-tile add).
    acc = jnp.full_like(x, params_ref[3 * HIDDEN])
    # Fully unrolled over the 16 hidden units: scalar-broadcast VPU mul/add/max,
    # accumulating the second layer's weighted sum directly (no XLU reduce, no MXU).
    for j in range(HIDDEN):
        w1_j = params_ref[j]
        b1_j = params_ref[HIDDEN + j]
        w2_j = params_ref[2 * HIDDEN + j]
        h_j = jnp.maximum(x * w1_j + b1_j, 0.0)
        acc = acc + w2_j * h_j
    o_ref[...] = acc


def pack_params(w1, b1, w2, b2):
    """Pack all 49 parameters into one SMEM-friendly (64,) f32 array."""
    params = jnp.zeros((64,), jnp.float32)
    params = params.at[0:HIDDEN].set(jnp.asarray(w1, jnp.float32).reshape(HIDDEN))
    params = params.at[HIDDEN:2 * HIDDEN].set(jnp.asarray(b1, jnp.float32).reshape(HIDDEN))
    params = params.at[2 * HIDDEN:3 * HIDDEN].set(jnp.asarray(w2, jnp.float32).reshape(HIDDEN))
    params = params.at[3 * HIDDEN].set(jnp.asarray(b2, jnp.float32).reshape(()))
    return params


def _studentnet_call(params, x_lane, tm):
    rows_pad = x_lane.shape[0]
    grid = (rows_pad // tm,)
    return pl.pallas_call(
        studentnet_kernel,
        out_shape=jax.ShapeDtypeStruct((rows_pad, LANES), jnp.float32),
        grid_spec=pl.GridSpec(
            grid=grid,
            in_specs=[
                pl.BlockSpec(memory_space=pltpu.MemorySpace.SMEM),  # packed params
                pl.BlockSpec((tm, LANES), lambda i: (i, 0)),        # x batch tile
            ],
            out_specs=pl.BlockSpec((tm, LANES), lambda i: (i, 0)),
        ),
        compiler_params=pltpu.CompilerParams(
            dimension_semantics=("parallel",),
        ),
        cost_estimate=pl.CostEstimate(
            flops=80 * rows_pad * LANES,                        # ~80 VALU ops / element
            transcendentals=0,
            bytes_accessed=2 * rows_pad * LANES * 4 + 64 * 4,   # x in + y out + params
        ),
    )(params, x_lane)


def studentnet_forward(x, w1, b1, w2, b2, *, block_rows=2048):
    """x: (B, 1) f32 -> (B, 1) f32.

    Weights are stored transposed relative to torch: w1=(1,16), b1=(16,),
    w2=(16,1), b2=(1,), so the math matches Linear(1,16) -> ReLU -> Linear(16,1).
    """
    B = x.shape[0]
    rows = max(1, pl.cdiv(B, LANES))
    tm, rows_pad = _choose_grid(rows, block_rows)
    n_pad = rows_pad * LANES

    # Lane-dense batch layout; pad ONLY when B isn't already tile-aligned.
    x_flat = x.reshape(-1).astype(jnp.float32)
    if n_pad != B:
        # Padded lanes produce finite garbage (relu(b1)*w2 + b2), trimmed below.
        x_flat = jnp.pad(x_flat, (0, n_pad - B))
    x_lane = x_flat.reshape(rows_pad, LANES)

    out_lane = _studentnet_call(pack_params(w1, b1, w2, b2), x_lane, tm)

    out_flat = out_lane.reshape(-1)
    if n_pad != B:
        out_flat = out_flat[:B]
    return out_flat.reshape(B, 1)


def init_params(key):
    """Deterministic init mimicking PyTorch nn.Linear (uniform +/- 1/sqrt(fan_in))."""
    k1, k2, k3, k4 = jax.random.split(key, 4)
    bound1 = 1.0                       # fan_in = 1
    bound2 = 1.0 / jnp.sqrt(16.0)      # fan_in = 16
    w1 = jax.random.uniform(k1, (1, HIDDEN), jnp.float32, -bound1, bound1)
    b1 = jax.random.uniform(k2, (HIDDEN,), jnp.float32, -bound1, bound1)
    w2 = jax.random.uniform(k3, (HIDDEN, 1), jnp.float32, -bound2, bound2)
    b2 = jax.random.uniform(k4, (1,), jnp.float32, -bound2, bound2)
    return w1, b1, w2, b2


def reference(x, w1, b1, w2, b2):
    return jnp.maximum(x @ w1 + b1, 0.0) @ w2 + b2


if __name__ == "__main__":
    key = jax.random.PRNGKey(0)
    k_x1, k_x2, k_p = jax.random.split(key, 3)
    w1, b1, w2, b2 = init_params(k_p)

    # Small batch, not a multiple of 128 -> exercises the pad + trim path
    # (single-step grid; launch-bound, expected for tiny B).
    B1 = 300
    x1 = jax.random.normal(k_x1, (B1, 1), jnp.float32)
    out1 = jax.block_until_ready(studentnet_forward(x1, w1, b1, w2, b2))
    ref1 = reference(x1, w1, b1, w2, b2)
    assert out1.shape == (B1, 1)
    assert jnp.allclose(out1, ref1, atol=1e-5, rtol=1e-5)

    # Larger batch exactly equal to 4 tiles of 256 rows x 128 lanes ->
    # no wrapper pad / trim (pure layout reshape), a 4-step "parallel" grid so
    # the x/o DMAs double-buffer under the VPU work and v7x's two TensorCores
    # each get 2 balanced steps.
    B2 = 4 * MIN_TM * LANES   # 131072
    x2 = jax.random.normal(k_x2, (B2, 1), jnp.float32)
    out2 = jax.block_until_ready(studentnet_forward(x2, w1, b1, w2, b2))
    ref2 = reference(x2, w1, b1, w2, b2)
    assert out2.shape == (B2, 1)
    assert jnp.allclose(out2, ref2, atol=1e-5, rtol=1e-5)

    print("KERNEL_OK")
</pallas_src>

<mosaic_0001>
module attributes {stable_mosaic.version = 11 : i64} {
  func.func @studentnet_kernel(%arg0: i32, %arg1: memref<64xf32, #tpu.memory_space<smem>>, %arg2: memref<8x128xf32, #tpu.memory_space<vmem>>, %arg3: memref<8x128xf32, #tpu.memory_space<vmem>>) attributes {dimension_semantics = [#tpu.dimension_semantics<parallel>], iteration_bounds = array<i64: 1>, scalar_prefetch = 0 : i64, scratch_operands = 0 : i64, tpu.core_type = #tpu.core_type<tc>, window_params = [{transform_indices = @transform_0, window_bounds = array<i64: 64>}, {transform_indices = @transform_1, window_bounds = array<i64: 8, 128>}, {transform_indices = @transform_2, window_bounds = array<i64: 8, 128>}]} {
    %c0 = arith.constant 0 : index
    %c0_0 = arith.constant 0 : index
    %0 = vector.load %arg2[%c0, %c0_0] : memref<8x128xf32, #tpu.memory_space<vmem>>, vector<8x128xf32>
    %c48 = arith.constant 48 : index
    %1 = memref.load %arg1[%c48] : memref<64xf32, #tpu.memory_space<smem>>
    %2 = vector.broadcast %1 : f32 to vector<8x128xf32>
    %c0_1 = arith.constant 0 : index
    %3 = memref.load %arg1[%c0_1] : memref<64xf32, #tpu.memory_space<smem>>
    %c16 = arith.constant 16 : index
    %4 = memref.load %arg1[%c16] : memref<64xf32, #tpu.memory_space<smem>>
    %c32 = arith.constant 32 : index
    %5 = memref.load %arg1[%c32] : memref<64xf32, #tpu.memory_space<smem>>
    %6 = vector.broadcast %3 : f32 to vector<8x128xf32>
    %7 = arith.mulf %0, %6 : vector<8x128xf32>
    %8 = vector.broadcast %4 : f32 to vector<8x128xf32>
    %9 = arith.addf %7, %8 : vector<8x128xf32>
    %cst = arith.constant 0.000000e+00 : f32
    %10 = vector.broadcast %cst : f32 to vector<8x128xf32>
    %11 = arith.maximumf %9, %10 : vector<8x128xf32>
    %12 = vector.broadcast %5 : f32 to vector<8x128xf32>
    %13 = arith.mulf %12, %11 : vector<8x128xf32>
    %14 = arith.addf %2, %13 : vector<8x128xf32>
    %c1 = arith.constant 1 : index
    %15 = memref.load %arg1[%c1] : memref<64xf32, #tpu.memory_space<smem>>
    %c17 = arith.constant 17 : index
    %16 = memref.load %arg1[%c17] : memref<64xf32, #tpu.memory_space<smem>>
    %c33 = arith.constant 33 : index
    %17 = memref.load %arg1[%c33] : memref<64xf32, #tpu.memory_space<smem>>
    %18 = vector.broadcast %15 : f32 to vector<8x128xf32>
    %19 = arith.mulf %0, %18 : vector<8x128xf32>
    %20 = vector.broadcast %16 : f32 to vector<8x128xf32>
    %21 = arith.addf %19, %20 : vector<8x128xf32>
    %cst_2 = arith.constant 0.000000e+00 : f32
    %22 = vector.broadcast %cst_2 : f32 to vector<8x128xf32>
    %23 = arith.maximumf %21, %22 : vector<8x128xf32>
    %24 = vector.broadcast %17 : f32 to vector<8x128xf32>
    %25 = arith.mulf %24, %23 : vector<8x128xf32>
    %26 = arith.addf %14, %25 : vector<8x128xf32>
    %c2 = arith.constant 2 : index
    %27 = memref.load %arg1[%c2] : memref<64xf32, #tpu.memory_space<smem>>
    %c18 = arith.constant 18 : index
    %28 = memref.load %arg1[%c18] : memref<64xf32, #tpu.memory_space<smem>>
    %c34 = arith.constant 34 : index
    %29 = memref.load %arg1[%c34] : memref<64xf32, #tpu.memory_space<smem>>
    %30 = vector.broadcast %27 : f32 to vector<8x128xf32>
    %31 = arith.mulf %0, %30 : vector<8x128xf32>
    %32 = vector.broadcast %28 : f32 to vector<8x128xf32>
    %33 = arith.addf %31, %32 : vector<8x128xf32>
    %cst_3 = arith.constant 0.000000e+00 : f32
    %34 = vector.broadcast %cst_3 : f32 to vector<8x128xf32>
    %35 = arith.maximumf %33, %34 : vector<8x128xf32>
    %36 = vector.broadcast %29 : f32 to vector<8x128xf32>
    %37 = arith.mulf %36, %35 : vector<8x128xf32>
    %38 = arith.addf %26, %37 : vector<8x128xf32>
    %c3 = arith.constant 3 : index
    %39 = memref.load %arg1[%c3] : memref<64xf32, #tpu.memory_space<smem>>
    %c19 = arith.constant 19 : index
    %40 = memref.load %arg1[%c19] : memref<64xf32, #tpu.memory_space<smem>>
    %c35 = arith.constant 35 : index
    %41 = memref.load %arg1[%c35] : memref<64xf32, #tpu.memory_space<smem>>
    %42 = vector.broadcast %39 : f32 to vector<8x128xf32>
    %43 = arith.mulf %0, %42 : vector<8x128xf32>
    %44 = vector.broadcast %40 : f32 to vector<8x128xf32>
    %45 = arith.addf %43, %44 : vector<8x128xf32>
    %cst_4 = arith.constant 0.000000e+00 : f32
    %46 = vector.broadcast %cst_4 : f32 to vector<8x128xf32>
    %47 = arith.maximumf %45, %46 : vector<8x128xf32>
    %48 = vector.broadcast %41 : f32 to vector<8x128xf32>
    %49 = arith.mulf %48, %47 : vector<8x128xf32>
    %50 = arith.addf %38, %49 : vector<8x128xf32>
    %c4 = arith.constant 4 : index
    %51 = memref.load %arg1[%c4] : memref<64xf32, #tpu.memory_space<smem>>
    %c20 = arith.constant 20 : index
    %52 = memref.load %arg1[%c20] : memref<64xf32, #tpu.memory_space<smem>>
    %c36 = arith.constant 36 : index
    %53 = memref.load %arg1[%c36] : memref<64xf32, #tpu.memory_space<smem>>
    %54 = vector.broadcast %51 : f32 to vector<8x128xf32>
    %55 = arith.mulf %0, %54 : vector<8x128xf32>
    %56 = vector.broadcast %52 : f32 to vector<8x128xf32>
    %57 = arith.addf %55, %56 : vector<8x128xf32>
    %cst_5 = arith.constant 0.000000e+00 : f32
    %58 = vector.broadcast %cst_5 : f32 to vector<8x128xf32>
    %59 = arith.maximumf %57, %58 : vector<8x128xf32>
    %60 = vector.broadcast %53 : f32 to vector<8x128xf32>
    %61 = arith.mulf %60, %59 : vector<8x128xf32>
    %62 = arith.addf %50, %61 : vector<8x128xf32>
    %c5 = arith.constant 5 : index
    %63 = memref.load %arg1[%c5] : memref<64xf32, #tpu.memory_space<smem>>
    %c21 = arith.constant 21 : index
    %64 = memref.load %arg1[%c21] : memref<64xf32, #tpu.memory_space<smem>>
    %c37 = arith.constant 37 : index
    %65 = memref.load %arg1[%c37] : memref<64xf32, #tpu.memory_space<smem>>
    %66 = vector.broadcast %63 : f32 to vector<8x128xf32>
    %67 = arith.mulf %0, %66 : vector<8x128xf32>
    %68 = vector.broadcast %64 : f32 to vector<8x128xf32>
    %69 = arith.addf %67, %68 : vector<8x128xf32>
    %cst_6 = arith.constant 0.000000e+00 : f32
    %70 = vector.broadcast %cst_6 : f32 to vector<8x128xf32>
    %71 = arith.maximumf %69, %70 : vector<8x128xf32>
    %72 = vector.broadcast %65 : f32 to vector<8x128xf32>
    %73 = arith.mulf %72, %71 : vector<8x128xf32>
    %74 = arith.addf %62, %73 : vector<8x128xf32>
    %c6 = arith.constant 6 : index
    %75 = memref.load %arg1[%c6] : memref<64xf32, #tpu.memory_space<smem>>
    %c22 = arith.constant 22 : index
    %76 = memref.load %arg1[%c22] : memref<64xf32, #tpu.memory_space<smem>>
    %c38 = arith.constant 38 : index
    %77 = memref.load %arg1[%c38] : memref<64xf32, #tpu.memory_space<smem>>
    %78 = vector.broadcast %75 : f32 to vector<8x128xf32>
    %79 = arith.mulf %0, %78 : vector<8x128xf32>
    %80 = vector.broadcast %76 : f32 to vector<8x128xf32>
    %81 = arith.addf %79, %80 : vector<8x128xf32>
    %cst_7 = arith.constant 0.000000e+00 : f32
    %82 = vector.broadcast %cst_7 : f32 to vector<8x128xf32>
    %83 = arith.maximumf %81, %82 : vector<8x128xf32>
    %84 = vector.broadcast %77 : f32 to vector<8x128xf32>
    %85 = arith.mulf %84, %83 : vector<8x128xf32>
    %86 = arith.addf %74, %85 : vector<8x128xf32>
    %c7 = arith.constant 7 : index
    %87 = memref.load %arg1[%c7] : memref<64xf32, #tpu.memory_space<smem>>
    %c23 = arith.constant 23 : index
    %88 = memref.load %arg1[%c23] : memref<64xf32, #tpu.memory_space<smem>>
    %c39 = arith.constant 39 : index
    %89 = memref.load %arg1[%c39] : memref<64xf32, #tpu.memory_space<smem>>
    %90 = vector.broadcast %87 : f32 to vector<8x128xf32>
    %91 = arith.mulf %0, %90 : vector<8x128xf32>
    %92 = vector.broadcast %88 : f32 to vector<8x128xf32>
    %93 = arith.addf %91, %92 : vector<8x128xf32>
    %cst_8 = arith.constant 0.000000e+00 : f32
    %94 = vector.broadcast %cst_8 : f32 to vector<8x128xf32>
    %95 = arith.maximumf %93, %94 : vector<8x128xf32>
    %96 = vector.broadcast %89 : f32 to vector<8x128xf32>
    %97 = arith.mulf %96, %95 : vector<8x128xf32>
    %98 = arith.addf %86, %97 : vector<8x128xf32>
    %c8 = arith.constant 8 : index
    %99 = memref.load %arg1[%c8] : memref<64xf32, #tpu.memory_space<smem>>
    %c24 = arith.constant 24 : index
    %100 = memref.load %arg1[%c24] : memref<64xf32, #tpu.memory_space<smem>>
    %c40 = arith.constant 40 : index
    %101 = memref.load %arg1[%c40] : memref<64xf32, #tpu.memory_space<smem>>
    %102 = vector.broadcast %99 : f32 to vector<8x128xf32>
    %103 = arith.mulf %0, %102 : vector<8x128xf32>
    %104 = vector.broadcast %100 : f32 to vector<8x128xf32>
    %105 = arith.addf %103, %104 : vector<8x128xf32>
    %cst_9 = arith.constant 0.000000e+00 : f32
    %106 = vector.broadcast %cst_9 : f32 to vector<8x128xf32>
    %107 = arith.maximumf %105, %106 : vector<8x128xf32>
    %108 = vector.broadcast %101 : f32 to vector<8x128xf32>
    %109 = arith.mulf %108, %107 : vector<8x128xf32>
    %110 = arith.addf %98, %109 : vector<8x128xf32>
    %c9 = arith.constant 9 : index
    %111 = memref.load %arg1[%c9] : memref<64xf32, #tpu.memory_space<smem>>
    %c25 = arith.constant 25 : index
    %112 = memref.load %arg1[%c25] : memref<64xf32, #tpu.memory_space<smem>>
    %c41 = arith.constant 41 : index
    %113 = memref.load %arg1[%c41] : memref<64xf32, #tpu.memory_space<smem>>
    %114 = vector.broadcast %111 : f32 to vector<8x128xf32>
    %115 = arith.mulf %0, %114 : vector<8x128xf32>
    %116 = vector.broadcast %112 : f32 to vector<8x128xf32>
    %117 = arith.addf %115, %116 : vector<8x128xf32>
    %cst_10 = arith.constant 0.000000e+00 : f32
    %118 = vector.broadcast %cst_10 : f32 to vector<8x128xf32>
    %119 = arith.maximumf %117, %118 : vector<8x128xf32>
    %120 = vector.broadcast %113 : f32 to vector<8x128xf32>
    %121 = arith.mulf %120, %119 : vector<8x128xf32>
    %122 = arith.addf %110, %121 : vector<8x128xf32>
    %c10 = arith.constant 10 : index
    %123 = memref.load %arg1[%c10] : memref<64xf32, #tpu.memory_space<smem>>
    %c26 = arith.constant 26 : index
    %124 = memref.load %arg1[%c26] : memref<64xf32, #tpu.memory_space<smem>>
    %c42 = arith.constant 42 : index
    %125 = memref.load %arg1[%c42] : memref<64xf32, #tpu.memory_space<smem>>
    %126 = vector.broadcast %123 : f32 to vector<8x128xf32>
    %127 = arith.mulf %0, %126 : vector<8x128xf32>
    %128 = vector.broadcast %124 : f32 to vector<8x128xf32>
    %129 = arith.addf %127, %128 : vector<8x128xf32>
    %cst_11 = arith.constant 0.000000e+00 : f32
    %130 = vector.broadcast %cst_11 : f32 to vector<8x128xf32>
    %131 = arith.maximumf %129, %130 : vector<8x128xf32>
    %132 = vector.broadcast %125 : f32 to vector<8x128xf32>
    %133 = arith.mulf %132, %131 : vector<8x128xf32>
    %134 = arith.addf %122, %133 : vector<8x128xf32>
    %c11 = arith.constant 11 : index
    %135 = memref.load %arg1[%c11] : memref<64xf32, #tpu.memory_space<smem>>
    %c27 = arith.constant 27 : index
    %136 = memref.load %arg1[%c27] : memref<64xf32, #tpu.memory_space<smem>>
    %c43 = arith.constant 43 : index
    %137 = memref.load %arg1[%c43] : memref<64xf32, #tpu.memory_space<smem>>
    %138 = vector.broadcast %135 : f32 to vector<8x128xf32>
    %139 = arith.mulf %0, %138 : vector<8x128xf32>
    %140 = vector.broadcast %136 : f32 to vector<8x128xf32>
    %141 = arith.addf %139, %140 : vector<8x128xf32>
    %cst_12 = arith.constant 0.000000e+00 : f32
    %142 = vector.broadcast %cst_12 : f32 to vector<8x128xf32>
    %143 = arith.maximumf %141, %142 : vector<8x128xf32>
    %144 = vector.broadcast %137 : f32 to vector<8x128xf32>
    %145 = arith.mulf %144, %143 : vector<8x128xf32>
    %146 = arith.addf %134, %145 : vector<8x128xf32>
    %c12 = arith.constant 12 : index
    %147 = memref.load %arg1[%c12] : memref<64xf32, #tpu.memory_space<smem>>
    %c28 = arith.constant 28 : index
    %148 = memref.load %arg1[%c28] : memref<64xf32, #tpu.memory_space<smem>>
    %c44 = arith.constant 44 : index
    %149 = memref.load %arg1[%c44] : memref<64xf32, #tpu.memory_space<smem>>
    %150 = vector.broadcast %147 : f32 to vector<8x128xf32>
    %151 = arith.mulf %0, %150 : vector<8x128xf32>
    %152 = vector.broadcast %148 : f32 to vector<8x128xf32>
    %153 = arith.addf %151, %152 : vector<8x128xf32>
    %cst_13 = arith.constant 0.000000e+00 : f32
    %154 = vector.broadcast %cst_13 : f32 to vector<8x128xf32>
    %155 = arith.maximumf %153, %154 : vector<8x128xf32>
    %156 = vector.broadcast %149 : f32 to vector<8x128xf32>
    %157 = arith.mulf %156, %155 : vector<8x128xf32>
    %158 = arith.addf %146, %157 : vector<8x128xf32>
    %c13 = arith.constant 13 : index
    %159 = memref.load %arg1[%c13] : memref<64xf32, #tpu.memory_space<smem>>
    %c29 = arith.constant 29 : index
    %160 = memref.load %arg1[%c29] : memref<64xf32, #tpu.memory_space<smem>>
    %c45 = arith.constant 45 : index
    %161 = memref.load %arg1[%c45] : memref<64xf32, #tpu.memory_space<smem>>
    %162 = vector.broadcast %159 : f32 to vector<8x128xf32>
    %163 = arith.mulf %0, %162 : vector<8x128xf32>
    %164 = vector.broadcast %160 : f32 to vector<8x128xf32>
    %165 = arith.addf %163, %164 : vector<8x128xf32>
    %cst_14 = arith.constant 0.000000e+00 : f32
    %166 = vector.broadcast %cst_14 : f32 to vector<8x128xf32>
    %167 = arith.maximumf %165, %166 : vector<8x128xf32>
    %168 = vector.broadcast %161 : f32 to vector<8x128xf32>
    %169 = arith.mulf %168, %167 : vector<8x128xf32>
    %170 = arith.addf %158, %169 : vector<8x128xf32>
    %c14 = arith.constant 14 : index
    %171 = memref.load %arg1[%c14] : memref<64xf32, #tpu.memory_space<smem>>
    %c30 = arith.constant 30 : index
    %172 = memref.load %arg1[%c30] : memref<64xf32, #tpu.memory_space<smem>>
    %c46 = arith.constant 46 : index
    %173 = memref.load %arg1[%c46] : memref<64xf32, #tpu.memory_space<smem>>
    %174 = vector.broadcast %171 : f32 to vector<8x128xf32>
    %175 = arith.mulf %0, %174 : vector<8x128xf32>
    %176 = vector.broadcast %172 : f32 to vector<8x128xf32>
    %177 = arith.addf %175, %176 : vector<8x128xf32>
    %cst_15 = arith.constant 0.000000e+00 : f32
    %178 = vector.broadcast %cst_15 : f32 to vector<8x128xf32>
    %179 = arith.maximumf %177, %178 : vector<8x128xf32>
    %180 = vector.broadcast %173 : f32 to vector<8x128xf32>
    %181 = arith.mulf %180, %179 : vector<8x128xf32>
    %182 = arith.addf %170, %181 : vector<8x128xf32>
    %c15 = arith.constant 15 : index
    %183 = memref.load %arg1[%c15] : memref<64xf32, #tpu.memory_space<smem>>
    %c31 = arith.constant 31 : index
    %184 = memref.load %arg1[%c31] : memref<64xf32, #tpu.memory_space<smem>>
    %c47 = arith.constant 47 : index
    %185 = memref.load %arg1[%c47] : memref<64xf32, #tpu.memory_space<smem>>
    %186 = vector.broadcast %183 : f32 to vector<8x128xf32>
    %187 = arith.mulf %0, %186 : vector<8x128xf32>
    %188 = vector.broadcast %184 : f32 to vector<8x128xf32>
    %189 = arith.addf %187, %188 : vector<8x128xf32>
    %cst_16 = arith.constant 0.000000e+00 : f32
    %190 = vector.broadcast %cst_16 : f32 to vector<8x128xf32>
    %191 = arith.maximumf %189, %190 : vector<8x128xf32>
    %192 = vector.broadcast %185 : f32 to vector<8x128xf32>
    %193 = arith.mulf %192, %191 : vector<8x128xf32>
    %194 = arith.addf %182, %193 : vector<8x128xf32>
    %c0_17 = arith.constant 0 : index
    %c0_18 = arith.constant 0 : index
    %195 = vector.load %arg3[%c0_17, %c0_18] : memref<8x128xf32, #tpu.memory_space<vmem>>, vector<8x128xf32>
    tpu.vector_store %arg3[%c0_17, %c0_18], %194 {strides = array<i32>} : memref<8x128xf32, #tpu.memory_space<vmem>>, vector<8x128xf32>,
    return
  }
  func.func @transform_0(%arg0: i32) -> i32 {
    %c0_i32 = arith.constant 0 : i32
    %c0_i32_0 = arith.constant 0 : i32
    return %c0_i32 : i32
  }
  func.func @transform_1(%arg0: i32) -> (i32, i32) {
    %c0_i32 = arith.constant 0 : i32
    %c0_i32_0 = arith.constant 0 : i32
    return %arg0, %c0_i32 : i32, i32
  }
  func.func @transform_2(%arg0: i32) -> (i32, i32) {
    %c0_i32 = arith.constant 0 : i32
    %c0_i32_0 = arith.constant 0 : i32
    return %arg0, %c0_i32 : i32, i32
  }
}

</mosaic_0001>

<bundles_post_ra>
// kernel: tpu_custom_call.1
= control target key start
LH: loop header
LB: loop body
LE: loop exit
PB: predicated region body
PF: predicated region fallthrough
CT: control target
= control target key end

     0   :  { %7 = vsyncpa [#allocation5], 0  ;;  %s549_s0 = inlined_call_operand.hbm [shape: f32[64], index: 0, kind: input, shape index: {}]   ;;  %s550_s1 = inlined_call_operand.hbm [shape: f32[8,128], index: 1, kind: input, shape index: {}]   ;;  %s551_s2 = inlined_call_operand.hbm [shape: f32[8,128], index: 2, kind: output, shape index: {}]  }
   0x1   :  { %8 = vsyncpa [#allocation3], 0 }
   0x2   :  { %9 = vsyncpa [#allocation4], 0  ;;  %s282_s11 = scalar_lea.hbm %s549_s0, 16 }
   0x3   :  { %p283_p0 = scmp.ne.s32.totalorder %s549_s0, %s282_s11  ;;  %p286_p1 = scmp.lt.u32.totalorder %s282_s11, %s549_s0 }
   0x5   :  { %p288_p2 = pnand %p286_p1, %p283_p0 }
   0x7   :  { %291 = shalt.err (!%p288_p2)
}
   0x8   :  { %s342_s16 = smov [#allocation2]   ;;  %s343_s19 = smov [#allocation6]  }
   0x9   :  { %17 = dma.hbm_to_smem %s549_s0, 16, %s342_s16, [#allocation5]  }
   0xa   :  { %s24_s20 = sshll.u32 %s343_s19, 4  ;;  %s292_s23 = scalar_lea.hbm %s550_s1, 128  ;;  %s25_s20 = int_to_ptr.vmem [resolvable:$true] %s24_s20 }
   0xb   :  { %p293_p3 = scmp.ne.s32.totalorder %s550_s1, %s292_s23  ;;  %p296_p4 = scmp.lt.u32.totalorder %s292_s23, %s550_s1 }
   0xd   :  { %p298_p5 = pnand %p296_p4, %p293_p3 }
   0xf   :  { %301 = shalt.err (!%p298_p5)
}
  0x10   :  { %s302_s28 = scalar_lea.vmem %s25_s20, 128  ;;  %p307_p7 = scmp.lt.s32.totalorder %s25_s20, %s25_s20 }
  0x11   :  { %p303_p6 = scmp.ne.s32.totalorder %s25_s20, %s302_s28  ;;  %p308_p8 = scmp.lt.s32.totalorder %s302_s28, %s302_s28 }
  0x13   :  { %p309_p9 = por %p308_p8, %p307_p7 }
  0x15   :  { %p310_p10 = pnand %p309_p9, %p303_p6 }
  0x17   :  { %313 = shalt.err (!%p310_p10)
}
  0x18   :  { %27 = dma.hbm_to_vmem [thread:$0]  %s550_s1, 128, %s25_s20, [#allocation3]  }
  0x19   :  { %336 = dma.done.wait [#allocation5], 16  }
  0x1a   :  { %337 = vsyncadd [#allocation5], 4294967280 }
  0x1b   :  { %338 = dma.done.wait [#allocation3], 128  }
  0x1c   :  { %339 = vsyncadd [#allocation3], 4294967168 }
  0x1d   :  { %34 = sfence }
  0x1e   :  { %s384_s30 = sld [smem:[#allocation2 + $0x30]]  ;;  %s234_s6 = sld [smem:[#allocation2 + $0x1]]  ;;  %v392_v0 = vld [vmem:[#allocation6] sm:$0xff] }
  0x1f   :  { %s38_s3 = sld [smem:[#allocation2]]  ;;  %s388_s7 = sld [smem:[#allocation2 + $0x11]] }
  0x20   :  { %s232_s4 = sld [smem:[#allocation2 + $0x10]]  ;;  %s390_s8 = sld [smem:[#allocation2 + $0x21]] }
  0x21   :  { %s386_s5 = sld [smem:[#allocation2 + $0x20]]  ;;  %s237_s9 = sld [smem:[#allocation2 + $0x2]] }
  0x22   :  { %s394_s1 = sld [smem:[#allocation2 + $0x12]]  ;;  %s398_s11 = sld [smem:[#allocation2 + $0x3]] }
  0x23   :  { %s396_s10 = sld [smem:[#allocation2 + $0x22]]  ;;  %s400_s12 = sld [smem:[#allocation2 + $0x13]] }
  0x24   :  { %s402_s13 = sld [smem:[#allocation2 + $0x23]]  ;;  %s404_s14 = sld [smem:[#allocation2 + $0x4]]  ;;  %v52_v4 = vstv %s234_s6  ;;  %v37_v6 = vstv %s384_s30 }
  0x25   :  { %v41_v1 = vstv %s38_s3  ;;  %s407_s15 = sld [smem:[#allocation2 + $0x14]]  ;;  %v54_v5 = vstv %s388_s7  ;;  %s412_s17 = sld [smem:[#allocation2 + $0x5]]  ;;  %v53_v8 = vmul.f32 %v52_v4, %v392_v0 }
  0x26   :  { %v42_v2 = vmul.f32 %v41_v1, %v392_v0  ;;  %v43_v3 = vstv %s232_s4  ;;  %s409_s16 = sld [smem:[#allocation2 + $0x24]]  ;;  %s414_s18 = sld [smem:[#allocation2 + $0x15]]  ;;  %v57_v11 = vstv %s390_s8 }
  0x27   :  { %v63_v9 = vstv %s237_s9  ;;  %s418_s19 = sld [smem:[#allocation2 + $0x6]]  ;;  %v46_v10 = vstv %s386_s5  ;;  %s424_s20 = sld [smem:[#allocation2 + $0x25]]  ;;  %v55_v15 = vadd.f32 %v54_v5, %v53_v8 }
  0x28   :  { %v44_v7 = vadd.f32 %v43_v3, %v42_v2  ;;  %v64_v12 = vmul.f32 %v63_v9, %v392_v0  ;;  %v65_v13 = vstv %s394_s1  ;;  %s426_s21 = sld [smem:[#allocation2 + $0x16]]  ;;  %v74_v16 = vstv %s398_s11  ;;  %s430_s22 = sld [smem:[#allocation2 + $0x7]] }
  0x29   :  { %v76_v17 = vstv %s400_s12  ;;  %v68_v19 = vstv %s396_s10  ;;  %v75_v20 = vmul.f32 %v74_v16, %v392_v0  ;;  %s435_s23 = sld [smem:[#allocation2 + $0x26]]  ;;  %s437_s24 = sld [smem:[#allocation2 + $0x17]]  ;;  %v56_v23 = vmax.f32 %v55_v15, 0.0 }
  0x2a   :  { %v45_v14 = vmax.f32 %v44_v7, 0.0  ;;  %v66_v18 = vadd.f32 %v65_v13, %v64_v12  ;;  %v85_v21 = vstv %s404_s14  ;;  %s441_s25 = sld [smem:[#allocation2 + $0x8]]  ;;  %v79_v28 = vstv %s402_s13  ;;  %s447_s27 = sld [smem:[#allocation2 + $0x27]] }
  0x2b   :  { %v86_v24 = vmul.f32 %v85_v21, %v392_v0  ;;  %v87_v25 = vstv %s407_s15  ;;  %s443_s26 = sld [smem:[#allocation2 + $0x18]]  ;;  %v77_v27 = vadd.f32 %v76_v17, %v75_v20  ;;  %v96_v29 = vstv %s412_s17  ;;  %s450_s28 = sld [smem:[#allocation2 + $0x9]] }
  0x2c   :  { %v47_v22 = vmul.f32 %v46_v10, %v45_v14  ;;  %v67_v26 = vmax.f32 %v66_v18, 0.0  ;;  %v58_v31 = vmul.f32 %v57_v11, %v56_v23  ;;  %v97_v33 = vmul.f32 %v96_v29, %v392_v0  ;;  %s452_s0 = sld [smem:[#allocation2 + $0x19]]  ;;  %s456_s29 = sld [smem:[#allocation2 + $0x28]] }
  0x2d   :  { %v88_v32 = vadd.f32 %v87_v25, %v86_v24  ;;  %v78_v35 = vmax.f32 %v77_v27, 0.0  ;;  %v90_v36 = vstv %s409_s16  ;;  %v98_v37 = vstv %s414_s18  ;;  %s459_s30 = sld [smem:[#allocation2 + $0xa]]  ;;  %s466_s4 = sld [smem:[#allocation2 + $0x29]] }
  0x2e   :  { %v48_v30 = vadd.f32 %v47_v22, %v37_v6  ;;  %v69_v34 = vmul.f32 %v68_v19, %v67_v26  ;;  %v99_v40 = vadd.f32 %v98_v37, %v97_v33  ;;  %v107_v41 = vstv %s418_s19  ;;  %s461_s3 = sld [smem:[#allocation2 + $0x1a]]  ;;  %s469_s5 = sld [smem:[#allocation2 + $0xb]] }
  0x2f   :  { %v89_v39 = vmax.f32 %v88_v32, 0.0  ;;  %v80_v42 = vmul.f32 %v79_v28, %v78_v35  ;;  %v101_v43 = vstv %s424_s20  ;;  %v108_v44 = vmul.f32 %v107_v41, %v392_v0  ;;  %s471_s6 = sld [smem:[#allocation2 + $0x1b]]  ;;  %s476_s7 = sld [smem:[#allocation2 + $0x2a]] }
  0x30   :  { %v59_v38 = vadd.f32 %v58_v31, %v48_v30  ;;  %v109_v45 = vstv %s426_s21  ;;  %v100_v48 = vmax.f32 %v99_v40, 0.0  ;;  %v118_v49 = vstv %s430_s22  ;;  %s480_s8 = sld [smem:[#allocation2 + $0xc]]  ;;  %s485_s1 = sld [smem:[#allocation2 + $0x2b]] }
  0x31   :  { %v91_v47 = vmul.f32 %v90_v36, %v89_v39  ;;  %v110_v50 = vadd.f32 %v109_v45, %v108_v44  ;;  %v112_v51 = vstv %s435_s23  ;;  %v119_v52 = vmul.f32 %v118_v49, %v392_v0  ;;  %s482_s9 = sld [smem:[#allocation2 + $0x1c]]  ;;  %s490_s10 = sld [smem:[#allocation2 + $0xd]] }
  0x32   :  { %v70_v46 = vadd.f32 %v69_v34, %v59_v38  ;;  %v120_v53 = vstv %s437_s24  ;;  %v102_v55 = vmul.f32 %v101_v43, %v100_v48  ;;  %v129_v56 = vstv %s441_s25  ;;  %s492_s11 = sld [smem:[#allocation2 + $0x1d]]  ;;  %s495_s12 = sld [smem:[#allocation2 + $0x2c]] }
  0x33   :  { %v131_v57 = vstv %s443_s26  ;;  %v111_v58 = vmax.f32 %v110_v50, 0.0  ;;  %v121_v59 = vadd.f32 %v120_v53, %v119_v52  ;;  %v130_v60 = vmul.f32 %v129_v56, %v392_v0  ;;  %s500_s13 = sld [smem:[#allocation2 + $0xe]]  ;;  %s505_s15 = sld [smem:[#allocation2 + $0x2d]] }
  0x34   :  { %v81_v54 = vadd.f32 %v80_v42, %v70_v46  ;;  %v123_v62 = vstv %s447_s27  ;;  %v140_v63 = vstv %s450_s28  ;;  %v142_v1 = vstv %s452_s0  ;;  %s502_s14 = sld [smem:[#allocation2 + $0x1e]]  ;;  %s510_s16 = sld [smem:[#allocation2 + $0xf]] }
  0x35   :  { %v113_v2 = vmul.f32 %v112_v51, %v111_v58  ;;  %v122_v3 = vmax.f32 %v121_v59, 0.0  ;;  %v132_v4 = vadd.f32 %v131_v57, %v130_v60  ;;  %v141_v5 = vmul.f32 %v140_v63, %v392_v0  ;;  %s512_s17 = sld [smem:[#allocation2 + $0x1f]]  ;;  %s518_s18 = sld [smem:[#allocation2 + $0x2e]] }
  0x36   :  { %v92_v61 = vadd.f32 %v91_v47, %v81_v54  ;;  %v134_v7 = vstv %s456_s29  ;;  %v151_v8 = vstv %s459_s30  ;;  %v153_v9 = vstv %s461_s3  ;;  %s524_s19 = sld [smem:[#allocation2 + $0x2f]]  ;;  %s344_s20 = smov [#allocation7]  }
  0x37   :  { %v124_v10 = vmul.f32 %v123_v62, %v122_v3  ;;  %v133_v11 = vmax.f32 %v132_v4, 0.0  ;;  %v143_v12 = vadd.f32 %v142_v1, %v141_v5  ;;  %v152_v13 = vmul.f32 %v151_v8, %v392_v0  ;;  %s221_s21 = sshll.u32 %s344_s20, 4  ;;  %s222_s21 = int_to_ptr.vmem [resolvable:$true] %s221_s21 }
  0x38   :  { %v103_v6 = vadd.f32 %v102_v55, %v92_v61  ;;  %v145_v15 = vstv %s466_s4  ;;  %v162_v16 = vstv %s469_s5  ;;  %v164_v17 = vstv %s471_s6  ;;  %s314_s22 = scalar_lea.vmem %s222_s21, 128  ;;  %p319_p12 = scmp.lt.s32.totalorder %s222_s21, %s222_s21 }
  0x39   :  { %v135_v18 = vmul.f32 %v134_v7, %v133_v11  ;;  %v144_v19 = vmax.f32 %v143_v12, 0.0  ;;  %v154_v20 = vadd.f32 %v153_v9, %v152_v13  ;;  %v163_v21 = vmul.f32 %v162_v16, %v392_v0  ;;  %p315_p11 = scmp.ne.s32.totalorder %s222_s21, %s314_s22  ;;  %p320_p13 = scmp.lt.s32.totalorder %s314_s22, %s314_s22 }
  0x3a   :  { %v114_v14 = vadd.f32 %v113_v2, %v103_v6  ;;  %v156_v23 = vstv %s476_s7  ;;  %v173_v24 = vstv %s480_s8  ;;  %v175_v25 = vstv %s482_s9 }
  0x3b   :  { %v146_v26 = vmul.f32 %v145_v15, %v144_v19  ;;  %v155_v27 = vmax.f32 %v154_v20, 0.0  ;;  %v165_v28 = vadd.f32 %v164_v17, %v163_v21  ;;  %v174_v29 = vmul.f32 %v173_v24, %v392_v0  ;;  %p321_p0 = por %p320_p13, %p319_p12 }
  0x3c   :  { %v125_v22 = vadd.f32 %v124_v10, %v114_v14  ;;  %v167_v31 = vstv %s485_s1  ;;  %v184_v32 = vstv %s490_s10  ;;  %v186_v33 = vstv %s492_s11 }
  0x3d   :  { %v157_v34 = vmul.f32 %v156_v23, %v155_v27  ;;  %v166_v35 = vmax.f32 %v165_v28, 0.0  ;;  %v176_v36 = vadd.f32 %v175_v25, %v174_v29  ;;  %v185_v37 = vmul.f32 %v184_v32, %v392_v0  ;;  %p322_p1 = pnand %p321_p0, %p315_p11 }
  0x3e   :  { %v136_v30 = vadd.f32 %v135_v18, %v125_v22  ;;  %v178_v39 = vstv %s495_s12  ;;  %v195_v40 = vstv %s500_s13  ;;  %v197_v41 = vstv %s502_s14 }
  0x3f   :  { %v168_v42 = vmul.f32 %v167_v31, %v166_v35  ;;  %v177_v43 = vmax.f32 %v176_v36, 0.0  ;;  %v187_v44 = vadd.f32 %v186_v33, %v185_v37  ;;  %v196_v45 = vmul.f32 %v195_v40, %v392_v0 }
  0x40   :  { %v147_v38 = vadd.f32 %v146_v26, %v136_v30  ;;  %v189_v47 = vstv %s505_s15  ;;  %v206_v48 = vstv %s510_s16  ;;  %v208_v49 = vstv %s512_s17 }
  0x41   :  { %v179_v50 = vmul.f32 %v178_v39, %v177_v43  ;;  %v188_v51 = vmax.f32 %v187_v44, 0.0  ;;  %v198_v52 = vadd.f32 %v197_v41, %v196_v45  ;;  %v207_v53 = vmul.f32 %v206_v48, %v392_v0 }
  0x42   :  { %v158_v46 = vadd.f32 %v157_v34, %v147_v38  ;;  %v200_v55 = vstv %s518_s18  ;;  %v211_v60 = vstv %s524_s19 }
  0x43   :  { %v190_v56 = vmul.f32 %v189_v47, %v188_v51  ;;  %v199_v57 = vmax.f32 %v198_v52, 0.0  ;;  %v209_v58 = vadd.f32 %v208_v49, %v207_v53 }
  0x44   :  { %v169_v54 = vadd.f32 %v168_v42, %v158_v46 }
  0x45   :  { %v201_v61 = vmul.f32 %v200_v55, %v199_v57  ;;  %v210_v62 = vmax.f32 %v209_v58, 0.0 }
  0x46   :  { %v180_v59 = vadd.f32 %v179_v50, %v169_v54 }
  0x47   :  { %v212_v1 = vmul.f32 %v211_v60, %v210_v62 }
  0x48   :  { %v191_v63 = vadd.f32 %v190_v56, %v180_v59 }
  0x4a   :  { %v202_v2 = vadd.f32 %v201_v61, %v191_v63 }
  0x4c   :  { %v213_v3 = vadd.f32 %v212_v1, %v202_v2 }
  0x4e   :  { %214 = vst [vmem:[#allocation7] sm:$0xff] %v213_v3 }
  0x4f   :  { %325 = shalt.err (!%p322_p1)
}
  0x50   :  { %s326_s25 = scalar_lea.hbm %s551_s2, 128 }
  0x51   :  { %p327_p2 = scmp.ne.s32.totalorder %s551_s2, %s326_s25  ;;  %p330_p3 = scmp.lt.u32.totalorder %s326_s25, %s551_s2 }
  0x53   :  { %p332_p4 = pnand %p330_p3, %p327_p2 }
  0x55   :  { %335 = shalt.err (!%p332_p4)
}
  0x56   :  { %224 = dma.vmem_to_hbm [thread:$0]  %s222_s21, 128, %s551_s2, [#allocation4]  }
  0x57   :  { %340 = dma.done.wait [#allocation4], 128  }
  0x58   :  { %341 = vsyncadd [#allocation4], 4294967168 }
  0x59   :  { %228 = vsyncpa [#allocation3], 1 }
  0x5a   :  { %229 = vsyncpa [#allocation4], 1 }
  0x5b   :  { %230 = vsyncpa [#allocation5], 1 }

</bundles_post_ra>
